<compile_context>
chip_gen: v7x
topology: tpu7x:2x2x1
jax: 0.10.0
libtpu: 0.0.40
codegen_flags: <defaults>
</compile_context>

<pallas_src>
import functools

import jax
import jax.numpy as jnp
from jax import lax
from jax.experimental import pallas as pl
from jax.experimental.pallas import tpu as pltpu

KH = KW = 3        # 3x3 conv, stride 1, padding 1 ("same")
LANE = 128
SUBLANE = 8


def _round_up(x, m):
    return (x + m - 1) // m * m


def cnn_kernel(p_ref, wc_ref, bc_ref, wf_ref, bf_ref, o_ref, *, hw):
    """One image per grid step; all operands are lane-dense (padded to 128).

    p_ref : (1, M_pad, K_pad) bf16  im2col patch matrix (rows >= hw are zero)
    wc_ref: (K_pad, C_pad)    bf16  conv weight in im2col layout
    bc_ref: (1, C_pad)        f32   conv bias (zero-padded)
    wf_ref: (C_pad, L_pad)    f32   fc weight (in x out, zero-padded)
    bf_ref: (1, L_pad)        f32   fc bias (zero-padded)
    o_ref : (1, 1, L_pad)     f32   logits (lane-dense store)
    """
    patches = p_ref[0]                                        # (M_pad, K_pad)

    # 3x3 conv as ONE im2col matmul on the MXU, f32 accumulation.
    acc = jnp.dot(patches, wc_ref[...], preferred_element_type=jnp.float32)
    acc = jnp.maximum(acc + bc_ref[...], 0.0)                 # bias + ReLU

    # Global average pool as a (1, M) @ (M, C) matmul (keeps the MXU busy,
    # avoids a cross-sublane XLU reduction); zero-padded rows are excluded.
    m_pad = acc.shape[0]
    row = lax.broadcasted_iota(jnp.int32, (1, m_pad), 1)
    gap = jnp.where(row < hw, 1.0 / hw, 0.0).astype(jnp.float32)
    feat = jnp.dot(gap, acc, preferred_element_type=jnp.float32)   # (1, C_pad)

    # Replaced `fc` head: Linear(num_ftrs -> num_labels), f32.
    logits = jnp.dot(feat, wf_ref[...],
                     preferred_element_type=jnp.float32) + bf_ref[...]
    o_ref[0] = logits.astype(o_ref.dtype)


def cnn_forward(x_nchw, conv_w, conv_b, fc_w, fc_b):
    """conv_w: (Cout, Cin, KH, KW)   (PyTorch OIHW)
       conv_b: (Cout,)
       fc_w  : (num_labels, Cout)    (PyTorch out x in)
       fc_b  : (num_labels,)
    """
    N, Cin, H, W = x_nchw.shape
    Cout = conv_w.shape[0]
    L = fc_w.shape[0]
    HW = H * W
    K = KH * KW * Cin

    # Lane/sublane-aligned padded sizes.  128 keeps all generations happy at
    # these channel counts (256-alignment on v6e/v7x only pays off once the
    # real backbone's Cout exceeds 128).
    M_pad = _round_up(HW, SUBLANE)
    K_pad = _round_up(K, LANE)
    C_pad = _round_up(Cout, LANE)
    L_pad = _round_up(L, LANE)

    # ---- layout glue (plain JAX): im2col + lane padding --------------------
    x_nhwc = jnp.transpose(x_nchw, (0, 2, 3, 1))              # (N, H, W, Cin)
    x_zp = jnp.pad(x_nhwc, ((0, 0), (1, 1), (1, 1), (0, 0)))  # spatial halo
    # im2col: tap-major ordering [kh, kw, cin] to match the weight reshape.
    patches = jnp.concatenate(
        [x_zp[:, kh:kh + H, kw:kw + W, :]
         for kh in range(KH) for kw in range(KW)],
        axis=-1).reshape(N, HW, K)
    patches = jnp.pad(patches, ((0, 0), (0, M_pad - HW), (0, K_pad - K)))
    patches = patches.astype(jnp.bfloat16)

    # conv weight OIHW -> (KH, KW, Cin, Cout) -> (K, Cout); pad + bf16.
    wc = jnp.transpose(conv_w, (2, 3, 1, 0)).reshape(K, Cout)
    wc = jnp.pad(wc, ((0, K_pad - K), (0, C_pad - Cout))).astype(jnp.bfloat16)
    bc = jnp.pad(conv_b, (0, C_pad - Cout)).reshape(1, C_pad).astype(jnp.float32)

    wf = jnp.pad(jnp.transpose(fc_w),
                 ((0, C_pad - Cout), (0, L_pad - L))).astype(jnp.float32)
    bf = jnp.pad(fc_b, (0, L_pad - L)).reshape(1, L_pad).astype(jnp.float32)

    flops = 2 * N * (M_pad * K_pad * C_pad + M_pad * C_pad + C_pad * L_pad)
    bytes_accessed = (patches.size * 2 + wc.size * 2
                      + (bc.size + wf.size + bf.size + N * L_pad) * 4)

    out = pl.pallas_call(
        functools.partial(cnn_kernel, hw=HW),
        out_shape=jax.ShapeDtypeStruct((N, 1, L_pad), jnp.float32),
        grid_spec=pltpu.PrefetchScalarGridSpec(
            num_scalar_prefetch=0,
            grid=(N,),
            in_specs=[
                pl.BlockSpec((1, M_pad, K_pad), lambda n: (n, 0, 0)),
                pl.BlockSpec((K_pad, C_pad), lambda n: (0, 0)),
                pl.BlockSpec((1, C_pad), lambda n: (0, 0)),
                pl.BlockSpec((C_pad, L_pad), lambda n: (0, 0)),
                pl.BlockSpec((1, L_pad), lambda n: (0, 0)),
            ],
            out_specs=pl.BlockSpec((1, 1, L_pad), lambda n: (n, 0, 0)),
        ),
        compiler_params=pltpu.CompilerParams(
            dimension_semantics=("parallel",)),
        cost_estimate=pl.CostEstimate(
            flops=flops, transcendentals=0, bytes_accessed=bytes_accessed),
    )(patches, wc, bc, wf, bf)
    return out.reshape(N, L_pad)[:, :L]


if __name__ == "__main__":
    key = jax.random.PRNGKey(0)
    N, Cin, H, W = 2, 4, 16, 16
    Cout, num_labels = 8, 5

    k1, k2, k3, k4, k5 = jax.random.split(key, 5)
    x = jax.random.normal(k1, (N, Cin, H, W), jnp.float32)
    conv_w = 0.1 * jax.random.normal(k2, (Cout, Cin, KH, KW), jnp.float32)
    conv_b = 0.1 * jax.random.normal(k3, (Cout,), jnp.float32)
    fc_w = 0.1 * jax.random.normal(k4, (num_labels, Cout), jnp.float32)
    fc_b = 0.1 * jax.random.normal(k5, (num_labels,), jnp.float32)

    out = jax.block_until_ready(cnn_forward(x, conv_w, conv_b, fc_w, fc_b))

    # Pure-JAX f32 reference (PyTorch NCHW conv semantics).  Kernel uses bf16
    # MXU inputs with f32 accumulation, so compare with bf16-level tolerance.
    y = lax.conv_general_dilated(x, conv_w, (1, 1), ((1, 1), (1, 1)),
                                 dimension_numbers=("NCHW", "OIHW", "NCHW"))
    y = jnp.maximum(y + conv_b[None, :, None, None], 0.0)
    feat = jnp.mean(y, axis=(2, 3))
    ref = feat @ fc_w.T + fc_b

    assert out.shape == (N, num_labels)
    assert jnp.allclose(out, ref, atol=1e-2, rtol=1e-2), \
        f"max abs err {jnp.max(jnp.abs(out - ref))}"
    print("KERNEL_OK")
</pallas_src>

<mosaic_0001>
module attributes {stable_mosaic.version = 11 : i64} {
  func.func @cnn_kernel(%arg0: i32, %arg1: memref<1x256x128xbf16, #tpu.memory_space<vmem>>, %arg2: memref<128x128xbf16, #tpu.memory_space<vmem>>, %arg3: memref<1x128xf32, #tpu.memory_space<vmem>>, %arg4: memref<128x128xf32, #tpu.memory_space<vmem>>, %arg5: memref<1x128xf32, #tpu.memory_space<vmem>>, %arg6: memref<1x1x128xf32, #tpu.memory_space<vmem>>) attributes {dimension_semantics = [#tpu.dimension_semantics<parallel>], iteration_bounds = array<i64: 2>, scalar_prefetch = 0 : i64, scratch_operands = 0 : i64, tpu.core_type = #tpu.core_type<tc>, window_params = [{transform_indices = @transform_0, window_bounds = array<i64: 1, 256, 128>}, {pipeline_mode = #tpu.pipeline_mode<synchronous>, transform_indices = @transform_1, window_bounds = array<i64: 128, 128>}, {pipeline_mode = #tpu.pipeline_mode<synchronous>, transform_indices = @transform_2, window_bounds = array<i64: 1, 128>}, {pipeline_mode = #tpu.pipeline_mode<synchronous>, transform_indices = @transform_3, window_bounds = array<i64: 128, 128>}, {pipeline_mode = #tpu.pipeline_mode<synchronous>, transform_indices = @transform_4, window_bounds = array<i64: 1, 128>}, {transform_indices = @transform_5, window_bounds = array<i64: 1, 1, 128>}]} {
    %c0 = arith.constant 0 : index
    %c0_0 = arith.constant 0 : index
    %c0_1 = arith.constant 0 : index
    %0 = vector.load %arg1[%c0, %c0_0, %c0_1] : memref<1x256x128xbf16, #tpu.memory_space<vmem>>, vector<1x256x128xbf16>
    %1 = vector.shape_cast %0 : vector<1x256x128xbf16> to vector<256x128xbf16>
    %c0_2 = arith.constant 0 : index
    %c0_3 = arith.constant 0 : index
    %2 = vector.load %arg2[%c0_2, %c0_3] : memref<128x128xbf16, #tpu.memory_space<vmem>>, vector<128x128xbf16>
    %cst = arith.constant dense<0.000000e+00> : vector<256x128xf32>
    %3 = tpu.matmul %1, %2, %cst {dimension_numbers = #tpu.dot_dimension_numbers<[1], [0], [0], [1], [0, 0, 1, 1], [], []>} : vector<256x128xbf16>, vector<128x128xbf16>, vector<256x128xf32> -> vector<256x128xf32>
    %c0_4 = arith.constant 0 : index
    %c0_5 = arith.constant 0 : index
    %4 = vector.load %arg3[%c0_4, %c0_5] : memref<1x128xf32, #tpu.memory_space<vmem>>, vector<1x128xf32>
    %5 = vector.broadcast %4 : vector<1x128xf32> to vector<256x128xf32>
    %6 = arith.addf %3, %5 : vector<256x128xf32>
    %cst_6 = arith.constant 0.000000e+00 : f32
    %7 = vector.broadcast %cst_6 : f32 to vector<256x128xf32>
    %8 = arith.maximumf %6, %7 : vector<256x128xf32>
    %9 = tpu.iota {dimensions = array<i32: 1>} : vector<1x256xi32>
    %c256_i32 = arith.constant 256 : i32
    %10 = vector.broadcast %c256_i32 : i32 to vector<1x256xi32>
    %11 = arith.cmpi slt, %9, %10 : vector<1x256xi32>
    %cst_7 = arith.constant 3.906250e-03 : f32
    %cst_8 = arith.constant 0.000000e+00 : f32
    %12 = vector.broadcast %cst_7 : f32 to vector<1x256xf32>
    %13 = vector.broadcast %cst_8 : f32 to vector<1x256xf32>
    %14 = arith.select %11, %12, %13 : vector<1x256xi1>, vector<1x256xf32>
    %cst_9 = arith.constant dense<0.000000e+00> : vector<1x128xf32>
    %15 = tpu.matmul %14, %8, %cst_9 {dimension_numbers = #tpu.dot_dimension_numbers<[1], [0], [0], [1], [0, 0, 1, 1], [], []>} : vector<1x256xf32>, vector<256x128xf32>, vector<1x128xf32> -> vector<1x128xf32>
    %c0_10 = arith.constant 0 : index
    %c0_11 = arith.constant 0 : index
    %16 = vector.load %arg4[%c0_10, %c0_11] : memref<128x128xf32, #tpu.memory_space<vmem>>, vector<128x128xf32>
    %cst_12 = arith.constant dense<0.000000e+00> : vector<1x128xf32>
    %17 = tpu.matmul %15, %16, %cst_12 {dimension_numbers = #tpu.dot_dimension_numbers<[1], [0], [0], [1], [0, 0, 1, 1], [], []>} : vector<1x128xf32>, vector<128x128xf32>, vector<1x128xf32> -> vector<1x128xf32>
    %c0_13 = arith.constant 0 : index
    %c0_14 = arith.constant 0 : index
    %18 = vector.load %arg5[%c0_13, %c0_14] : memref<1x128xf32, #tpu.memory_space<vmem>>, vector<1x128xf32>
    %19 = arith.addf %17, %18 : vector<1x128xf32>
    %c0_15 = arith.constant 0 : index
    %c0_16 = arith.constant 0 : index
    %c0_17 = arith.constant 0 : index
    %20 = vector.load %arg6[%c0_15, %c0_16, %c0_17] : memref<1x1x128xf32, #tpu.memory_space<vmem>>, vector<1x1x128xf32>
    %21 = vector.shape_cast %20 : vector<1x1x128xf32> to vector<1x128xf32>
    %22 = vector.shape_cast %19 : vector<1x128xf32> to vector<1x1x128xf32>
    tpu.vector_store %arg6[%c0_15, %c0_16, %c0_17], %22 {strides = array<i32>} : memref<1x1x128xf32, #tpu.memory_space<vmem>>, vector<1x1x128xf32>,
    return
  }
  func.func @transform_0(%arg0: i32) -> (i32, i32, i32) {
    %c0_i32 = arith.constant 0 : i32
    %c0_i32_0 = arith.constant 0 : i32
    %c0_i32_1 = arith.constant 0 : i32
    return %arg0, %c0_i32, %c0_i32_0 : i32, i32, i32
  }
  func.func @transform_1(%arg0: i32) -> (i32, i32) {
    %c0_i32 = arith.constant 0 : i32
    %c0_i32_0 = arith.constant 0 : i32
    %c0_i32_1 = arith.constant 0 : i32
    return %c0_i32, %c0_i32_0 : i32, i32
  }
  func.func @transform_2(%arg0: i32) -> (i32, i32) {
    %c0_i32 = arith.constant 0 : i32
    %c0_i32_0 = arith.constant 0 : i32
    %c0_i32_1 = arith.constant 0 : i32
    return %c0_i32, %c0_i32_0 : i32, i32
  }
  func.func @transform_3(%arg0: i32) -> (i32, i32) {
    %c0_i32 = arith.constant 0 : i32
    %c0_i32_0 = arith.constant 0 : i32
    %c0_i32_1 = arith.constant 0 : i32
    return %c0_i32, %c0_i32_0 : i32, i32
  }
  func.func @transform_4(%arg0: i32) -> (i32, i32) {
    %c0_i32 = arith.constant 0 : i32
    %c0_i32_0 = arith.constant 0 : i32
    %c0_i32_1 = arith.constant 0 : i32
    return %c0_i32, %c0_i32_0 : i32, i32
  }
  func.func @transform_5(%arg0: i32) -> (i32, i32, i32) {
    %c0_i32 = arith.constant 0 : i32
    %c0_i32_0 = arith.constant 0 : i32
    %c0_i32_1 = arith.constant 0 : i32
    return %arg0, %c0_i32, %c0_i32_0 : i32, i32, i32
  }
}

</mosaic_0001>

<bundles_post_ra>
// kernel: tpu_custom_call.1
= control target key start
LH: loop header
LB: loop body
LE: loop exit
PB: predicated region body
PF: predicated region fallthrough
CT: control target
= control target key end

     0   :  { %10 = vsyncpa [#allocation3], 0  ;;  %s1805_s0 = inlined_call_operand.hbm [shape: bf16[2,256,128], index: 0, kind: input, shape index: {}]   ;;  %s1806_s1 = inlined_call_operand.hbm [shape: bf16[128,128], index: 1, kind: input, shape index: {}]   ;;  %s1807_s2 = inlined_call_operand.vmem [shape: f32[1,128], index: 2, kind: input, shape index: {}]   ;;  %s1808_s3 = inlined_call_operand.hbm [shape: f32[128,128], index: 3, kind: input, shape index: {}]   ;;  %s1809_s4 = inlined_call_operand.vmem [shape: f32[1,128], index: 4, kind: input, shape index: {}]   ;;  %s1810_s5 = inlined_call_operand.hbm [shape: f32[2,1,128], index: 5, kind: output, shape index: {}]  }
   0x1   :  { %12 = vsyncpa [#allocation3 + $0x1], 0 }
   0x2   :  { %13 = vsyncpa [#allocation6], 0 }
   0x3   :  { %14 = vsyncpa [#allocation4], 0 }
   0x4   :  { %16 = vsyncpa [#allocation4 + $0x1], 0  ;;  %s1482_s18 = smov 0   ;;  %s1484_s19 = smov 0  }
   0x5   :  { %s1486_s20 = smov 0   ;;  %s1488_s21 = smov 0  }
   0x6 LB: > { %s1503_s22 = sadd.s32 4294967295, %s1438_s21   ;;  %s927_s23 = sadd.s32 4294967294, %s1438_s21   ;;  %s1438_s21 = sphi %s1488_s21, %s1830_s21   ;;  %s1434_s20 = sphi %s1486_s20, %s1829_s20   ;;  %s1430_s19 = sphi %s1484_s19, %s1828_s19   ;;  %s1426_s18 = sphi %s1482_s18, %s1827_s18  }
   0x7   : > { %p42_p0 = scmp.ne.s32.totalorder %s1430_s19, %s1426_s18  ;;  %p1811_p1 = scmp.eq.s32.totalorder %s1503_s22, 0 }
   0x8   : > { %p156_p3 = scmp.eq.s32.totalorder %s927_s23, 1  ;;  %p928_p5 = scmp.ge.s32.totalorder %s1438_s21, 1 }
   0x9   : > { %p1512_p4 = por %p1811_p1, %p42_p0  ;;  %p163_p7 = scmp.lt.s32.totalorder %s1438_s21, 3 }
   0xa   : > { %p1517_p6 = por %p156_p3, %p42_p0  ;;  %s1440_s27 = smov [#allocation5]  }
   0xb   : > { %s1814_s24 = scalar_select %p1512_p4, 1, 0 }
   0xc   : > { %s1815_s25 = scalar_select %p1517_p6, 1, 0 }
   0xd   : > { %p1522_p8 = pnand %p928_p5, %p163_p7  ;;  %s175_s28 = sshll.u32 %s1440_s27, 4  ;;  %s1526_s28 = int_to_ptr.vmem [resolvable:$true] %s175_s28 }
   0xe   : > { %s1441_s30 = smov [#allocation7]   ;;  %s1282_s9 = scalar_lea.hbm %s1806_s1, 1024 }
   0xf   : > { %p1195_p9 = pneg %p1522_p8  ;;  %s191_s6 = sshll.u32 %s1441_s30, 4  ;;  %s1537_s6 = int_to_ptr.vmem [resolvable:$true] %s191_s6 }
  0x10   : > { %p1283_p12 = scmp.ne.s32.totalorder %s1806_s1, %s1282_s9  ;;  %p1289_p5 = scmp.lt.u32.totalorder %s1282_s9, %s1806_s1 }
  0x11   : > { %p1533_p11 = pnand %p1195_p9, %p1811_p1 }
  0x13   : > { %p1284_p13 = pneg %p1533_p11 }
  0x15   : > { %p1285_p0 = pnand %p1284_p13, %p1283_p12 }
  0x17   : > { %p1286_p3 = pneg %p1285_p0 }
  0x19   : > { %p1291_p7 = pnand %p1289_p5, %p1286_p3 }
  0x1b   : > { %1294 = shalt.err (!%p1291_p7)
}
  0x1c   : > { %s1295_s14 = scalar_lea.vmem %s1526_s28, 1024  ;;  %p1303_p2 = scmp.lt.s32.totalorder %s1526_s28, %s1526_s28 }
  0x1d   : > { %p1296_p9 = scmp.ne.s32.totalorder %s1526_s28, %s1295_s14  ;;  %p1304_p12 = scmp.lt.s32.totalorder %s1295_s14, %s1295_s14 }
  0x1f   : > { %p1298_p10 = pnand %p1296_p9, %p1284_p13  ;;  %p1305_p0 = por %p1304_p12, %p1303_p2 }
  0x21   : > { %p1299_p1 = pneg %p1298_p10 }
  0x23   : > { %p1306_p6 = pnand %p1305_p0, %p1299_p1 }
  0x25   : > { %1309 = shalt.err (!%p1306_p6)
}
  0x26   : > { %s1442_s15 = smov 64   ;;  %s1443_s16 = smov 4  }
  0x27   : > { %1198 = dma.hbm_to_vmem [thread:$0]  (!%p1533_p11), %s1806_s1, 1024, %s1526_s28, [#allocation6], %s1442_s15, %s1442_s15, %s1443_s16  }
  0x28   : > { %s1310_s7 = scalar_lea.hbm %s1808_s3, 2048 }
  0x29   : > { %p1311_p1 = scmp.ne.s32.totalorder %s1808_s3, %s1310_s7  ;;  %p1317_p10 = scmp.lt.u32.totalorder %s1310_s7, %s1808_s3 }
  0x2b   : > { %p1313_p2 = pnand %p1311_p1, %p1284_p13 }
  0x2d   : > { %p1314_p6 = pneg %p1313_p2 }
  0x2f   : > { %p1319_p3 = pnand %p1317_p10, %p1314_p6 }
  0x31   : > { %1322 = shalt.err (!%p1319_p3)
}
  0x32   : > { %s1323_s28 = scalar_lea.vmem %s1537_s6, 2048  ;;  %p1331_p12 = scmp.lt.s32.totalorder %s1537_s6, %s1537_s6 }
  0x33   : > { %p1324_p5 = scmp.ne.s32.totalorder %s1537_s6, %s1323_s28  ;;  %p1332_p0 = scmp.lt.s32.totalorder %s1323_s28, %s1323_s28 }
  0x35   : > { %p1326_p7 = pnand %p1324_p5, %p1284_p13  ;;  %p1333_p1 = por %p1332_p0, %p1331_p12 }
  0x37   : > { %p1327_p9 = pneg %p1326_p7 }
  0x39   : > { %p1334_p2 = pnand %p1333_p1, %p1327_p9 }
  0x3b   : > { %1337 = shalt.err (!%p1334_p2)
}
  0x3c   : > { %s1444_s12 = smov 128   ;;  %s1445_s13 = smov 8  }
  0x3d   : > { %1201 = dma.hbm_to_vmem [thread:$0]  (!%p1533_p11), %s1808_s3, 2048, %s1537_s6, [#allocation6], %s1444_s12, %s1444_s12, %s1445_s13  }
  0x3e   : > { %s1595_s23 = sadd.s32 1, %s1438_s21   ;;  %s29_s30 = sadd.s32 1, %s1434_s20 }
  0x3f   : > { %s26_s27 = ssub.s32 %s1438_s21, %s1595_s23  ;;  %p36_p6 = scmp.ne.s32.totalorder %s1434_s20, %s1430_s19 }
  0x40   : > { %p27_p13 = scmp.eq.s32.totalorder %s26_s27, 0  ;;  %p37_p10 = scmp.eq.s32.totalorder %s1438_s21, 0 }
  0x41   : > { %p1818_p5 = scmp.eq.s32.totalorder %s1503_s22, 1  ;;  %p1212_p9 = scmp.lt.s32.totalorder %s1438_s21, 2 }
  0x42   : > { %s1604_s7 = scalar_select %p27_p13, %s1434_s20, %s29_s30  }
  0x43   : > { %p38_p3 = por %p37_p10, %p36_p6  ;;  %p1608_p7 = por %p1818_p5, %p36_p6 }
  0x44   : > { %s208_s29 = sand.u32 1, %s1434_s20   ;;  %s967_s6 = sshll.u32 %s1438_s21, 11 }
  0x45   : > { %s1819_s8 = scalar_select %p1608_p7, 1, 0 }
  0x46   : > { %s932_s9 = sshll.u32 %s208_s29, 7  ;;  %s1618_s28 = scalar_lea.hbm %s1805_s0, %s967_s6 }
  0x47   : > { %s212_s12 = scalar_lea.vmem [#allocation2], %s932_s9  ;;  %p1622_p11 = pnand %p1212_p9, %p38_p3 }
  0x48   : > { %s219_s13 = sshll.u32 %s212_s12, 4  ;;  %s1626_s17 = scalar_lea.sflag [#allocation3], %s208_s29  ;;  %s1620_s13 = int_to_ptr.vmem [resolvable:$true] %s219_s13 }
  0x49   : > { %s1338_s27 = scalar_lea.hbm %s1618_s28, 2048  ;;  %p1340_p0 = pneg %p1622_p11 }
  0x4a   : > { %p1339_p12 = scmp.ne.s32.totalorder %s1618_s28, %s1338_s27  ;;  %s1343_s6 = scalar_lea.hbm %s1805_s0, 4096 }
  0x4b   : > { %p1344_p13 = scmp.lt.u32.totalorder %s1618_s28, %s1805_s0  ;;  %p1345_p6 = scmp.lt.u32.totalorder %s1343_s6, %s1338_s27 }
  0x4c   : > { %p1341_p1 = pnand %p1340_p0, %p1339_p12  ;;  %p1347_p3 = scmp.lt.u32.totalorder %s1338_s27, %s1618_s28 }
  0x4d   : > { %p1346_p10 = por %p1345_p6, %p1344_p13 }
  0x4e   : > { %p1342_p2 = pneg %p1341_p1 }
  0x4f   : > { %p1348_p5 = por %p1347_p3, %p1346_p10 }
  0x51   : > { %p1349_p9 = pnand %p1348_p5, %p1342_p2 }
  0x53   : > { %1352 = shalt.err (!%p1349_p9)
}
  0x54   : > { %s1353_s29 = scalar_lea.vmem %s1620_s13, 2048  ;;  %s1446_s12 = smov [#allocation2]  }
  0x55   : > { %p1354_p12 = scmp.ne.s32.totalorder %s1620_s13, %s1353_s29  ;;  %s1358_s30 = sshll.u32 %s1446_s12, 4  ;;  %s1359_s30 = int_to_ptr.vmem [resolvable:$false] %s1358_s30 }
  0x56   : > { %s1360_s9 = scalar_lea.vmem %s1359_s30, 4096  ;;  %p1361_p4 = scmp.lt.s32.totalorder %s1620_s13, %s1359_s30 }
  0x57   : > { %p1356_p1 = pnand %p1354_p12, %p1340_p0  ;;  %p1362_p13 = scmp.lt.s32.totalorder %s1360_s9, %s1353_s29 }
  0x59   : > { %p1357_p7 = pneg %p1356_p1  ;;  %p1363_p6 = por %p1362_p13, %p1361_p4 }
  0x5b   : > { %p1364_p10 = pnand %p1363_p6, %p1357_p7 }
  0x5d   : > { %1367 = shalt.err (!%p1364_p10)
}
  0x5e   : > { %1205 = dma.hbm_to_vmem [thread:$0]  (!%p1622_p11), %s1618_s28, 2048, %s1620_s13, %s1626_s17, %s1442_s15, %s1442_s15, %s1443_s16  }
  0x5f   : > { %231 = sbr.rel (%p1522_p8) target bundleno = 867 (0x363), region = 40  ;;  %s1660_s27 = sand.u32 (!%p1522_p8), 1, %s1430_s19  }
  0x60   : > { %s936_s6 = sshll.u32 (!%p1522_p8), %s1660_s27, 7  ;;  %s234_s10 = scalar_lea.sflag (!%p1522_p8), [#allocation3], %s1660_s27 }
  0x61   : > { %s1664_s11 = scalar_lea.vmem (!%p1522_p8), [#allocation2], %s936_s6  ;;  %p1821_p4 = scmp.ne.s32.totalorder (!%p1522_p8), %s1814_s24, 0 }
  0x66   : > { %1413 = dma.done.wait (%p1821_p4), %s234_s10, 2048  }
  0x67   : > { %1415 = vsyncadd (%p1821_p4), %s234_s10, 4294965248  ;;  %p1822_p7 = scmp.eq.s32.totalorder %s1503_s22, 0 }
  0x69   : > { %1417 = dma.done.wait (%p1822_p7), [#allocation6], 3072   ;;  %p1823_p8 = pmov %p1822_p7 }
  0x6a   : > { %v1258_v0 = vld [vmem:[#allocation5] sm:$0xff]   ;;  %v1259_v1 = vld [vmem:[#allocation5 + $0x8] sm:$0xff]   ;;  %v1260_v2 = vld [vmem:[#allocation5 + $0x10] sm:$0xff]   ;;  %v1447_v24 = vmov 0.00390625   ;;  %vm1449_vm0 = vmmov 0   ;;  %s964_s28 = sshll.u32 %s1503_s22, 4 }
  0x6b   : > { %1419 = vsyncadd (%p1823_p8), [#allocation6], 4294964224  ;;  %1044 = vmatprep.subr.bf16.mxu0 %v1258_v0  ;;  %v1261_v3 = vld [vmem:[#allocation5 + $0x18] sm:$0xff]   ;;  %v1266_v4 = vld [vmem:[%s1664_s11] sm:$0xff]   ;;  %735 = vmatprep.mubr.f32.mxu1 %v1447_v24  ;;  %s270_s13 = scalar_lea.vmem [#allocation8], %s1660_s27  ;;  %s1761_s12 = scalar_lea.hbm %s1810_s5, %s964_s28 }
  0x6c   : > { %1045 = vmatpush3.bf16.msra.mxu0 %v1258_v0  ;;  %1060 = vmatprep.mubr.bf16.mxu0 %v1266_v4  ;;  %v1262_v5 = vld [vmem:[#allocation5 + $0x20] sm:$0xff]   ;;  %v1263_v6 = vld [vmem:[#allocation5 + $0x28] sm:$0xff]   ;;  %v1264_v7 = vld [vmem:[#allocation5 + $0x30] sm:$0xff]   ;;  %s842_s14 = sshll.u32 %s270_s13, 4  ;;  %s830_s30 = scalar_lea.sflag [#allocation4], %s1660_s27  ;;  %s1763_s14 = int_to_ptr.vmem [resolvable:$true] %s842_s14 }
  0x6d   : > { %1046 = vmatprep.subr.bf16.mxu0 %v1259_v1  ;;  %v1265_v8 = vld [vmem:[#allocation5 + $0x38] sm:$0xff]   ;;  %v1267_v9 = vld [vmem:[%s1664_s11 + $0x8] sm:$0xff]   ;;  %v1268_v10 = vld [vmem:[%s1664_s11 + $0x10] sm:$0xff]   ;;  %s1368_s9 = scalar_lea.vmem %s1763_s14, 16  ;;  %p1824_p0 = scmp.ne.s32.totalorder %s1819_s8, 0 }
  0x6e   : > { %v1269_v11 = vld [vmem:[%s1664_s11 + $0x18] sm:$0xff]   ;;  %v1270_v12 = vld [vmem:[%s1664_s11 + $0x20] sm:$0xff]   ;;  %v1271_v13 = vld [vmem:[%s1664_s11 + $0x28] sm:$0xff]   ;;  %p1369_p11 = scmp.ne.s32.totalorder %s1763_s14, %s1368_s9  ;;  %s1451_s22 = smov [#allocation8]  }
  0x6f   : > { %v1272_v14 = vld [vmem:[%s1664_s11 + $0x30] sm:$0xff]   ;;  %v1273_v15 = vld [vmem:[%s1664_s11 + $0x38] sm:$0xff]   ;;  %v1274_v16 = vld [vmem:[%s1664_s11 + $0x40] sm:$0xff]   ;;  %s1372_s6 = sshll.u32 %s1451_s22, 4  ;;  %s1373_s6 = int_to_ptr.vmem [resolvable:$false] %s1372_s6 }
  0x70   : > { %1047 = vmatpush3.bf16.msra.mxu0 %v1259_v1  ;;  %v1275_v17 = vld [vmem:[%s1664_s11 + $0x48] sm:$0xff]   ;;  %v1276_v18 = vld [vmem:[%s1664_s11 + $0x50] sm:$0xff]   ;;  %v1277_v19 = vld [vmem:[%s1664_s11 + $0x58] sm:$0xff]   ;;  %p1370_p2 = pnand %p1369_p11, %p1824_p0  ;;  %s1374_s10 = scalar_lea.vmem %s1373_s6, 32 }
  0x71   : > { %1048 = vmatprep.subr.bf16.mxu0 %v1260_v2  ;;  %v1278_v20 = vld [vmem:[%s1664_s11 + $0x60] sm:$0xff]   ;;  %v1279_v21 = vld [vmem:[%s1664_s11 + $0x68] sm:$0xff]   ;;  %v1280_v22 = vld [vmem:[%s1664_s11 + $0x70] sm:$0xff]   ;;  %p1375_p5 = scmp.lt.s32.totalorder %s1763_s14, %s1373_s6  ;;  %p1376_p9 = scmp.lt.s32.totalorder %s1374_s10, %s1368_s9 }
  0x72   : > { %v1281_v23 = vld [vmem:[%s1664_s11 + $0x78] sm:$0xff]   ;;  %v1694_v25 = vld [vmem:[%s1807_s2] ss:$0 sm:$0xff]  ;;  %p1371_p3 = pneg %p1370_p2 }
  0x73   : > { %p1377_p12 = por %p1376_p9, %p1375_p5 }
  0x74   : > { %1049 = vmatpush3.bf16.msra.mxu0 %v1260_v2 }
  0x75   : > { %1050 = vmatprep.subr.bf16.mxu0 %v1261_v3  ;;  %p1378_p1 = pnand %p1377_p12, %p1371_p3 }
  0x78   : > { %1051 = vmatpush3.bf16.msra.mxu0 %v1261_v3 }
  0x79   : > { %1052 = vmatprep.subr.bf16.mxu0 %v1262_v5 }
  0x7c   : > { %1053 = vmatpush3.bf16.msra.mxu0 %v1262_v5 }
  0x7d   : > { %1054 = vmatprep.subr.bf16.mxu0 %v1263_v6 }
  0x80   : > { %1055 = vmatpush3.bf16.msra.mxu0 %v1263_v6 }
  0x81   : > { %1056 = vmatprep.subr.bf16.mxu0 %v1264_v7 }
  0x84   : > { %1057 = vmatpush3.bf16.msra.mxu0 %v1264_v7 }
  0x85   : > { %1058 = vmatprep.subr.bf16.mxu0 %v1265_v8 }
  0x88   : > { %1059 = vmatpush3.bf16.msra.mxu0 %v1265_v8 }
  0x8b   : > { %1061 = vmatmul.mubr.bf16.vlgmr.msra.gmra.mrb[0].mxu0 %v1267_v9 }
  0x8c   : > { %1064 = vmatprep.mubr.bf16.mxu0 %v1268_v10 }
  0x93   : > { %1065 = vmatmul.mubr.bf16.gmra.mrb[4].mxu0 %v1269_v11 }
  0x94   : > { %1068 = vmatprep.mubr.bf16.mxu0 %v1270_v12 }
  0x9b   : > { %1069 = vmatmul.mubr.bf16.gmra.mrb[8].mxu0 %v1271_v13 }
  0x9c   : > { %1072 = vmatprep.mubr.bf16.mxu0 %v1272_v14 }
  0xa3   : > { %1073 = vmatmul.mubr.bf16.gmra.mrb[12].mxu0 %v1273_v15 }
  0xa4   : > { %1076 = vmatprep.mubr.bf16.mxu0 %v1274_v16 }
  0xab   : > { %1077 = vmatmul.mubr.bf16.gmra.mrb[16].mxu0 %v1275_v17 }
  0xac   : > { %1080 = vmatprep.mubr.bf16.mxu0 %v1276_v18 }
  0xb3   : > { %1081 = vmatmul.mubr.bf16.gmra.mrb[20].mxu0 %v1277_v19 }
  0xb4   : > { %1084 = vmatprep.mubr.bf16.mxu0 %v1278_v20 }
  0xbb   : > { %1085 = vmatmul.mubr.bf16.gmra.mrb[24].mxu0 %v1279_v21 }
  0xbc   : > { %1088 = vmatprep.mubr.bf16.mxu0 %v1280_v22 }
  0xc3   : > { %1089 = vmatmul.mubr.bf16.gmra.mrb[28].mxu0 %v1281_v23 }
 0x15e   : > { %v1062_v26 = vpop.f32.mrb[0].mxu0 }
 0x15f   : > { %v514_v27 = vadd.f32 %v1062_v26, %v1694_v25  ;;  %v505_v28 = vpop.f32.mrb[1].mxu0 }
 0x160   : > { %v506_v29 = vadd.f32 %v1694_v25, %v505_v28  ;;  %v1063_v30 = vpop.f32.mrb[2].mxu0 }
 0x161   : > { %v517_v31 = vadd.f32 %v1063_v30, %v1694_v25  ;;  %v508_v32 = vpop.f32.mrb[3].mxu0  ;;  %v634_v34 = vmax.f32 %v514_v27, 0.0 }
 0x162   : > { %v509_v33 = vadd.f32 %v1694_v25, %v508_v32  ;;  %v632_v36 = vmax.f32 %v506_v29, 0.0 }
 0x163   : > { %v635_v35 = vmax.f32 %v517_v31, 0.0 }
 0x164   : > { %v633_v37 = vmax.f32 %v509_v33, 0.0 }
 0x165   : > { %v1700_v38 = vpack.c.bf16 %v635_v35, %v634_v34 }
 0x166   : > { %v1066_v39 = vpop.f32.mrb[4].mxu0  ;;  %v1702_v40 = vpack.c.bf16 %v633_v37, %v632_v36 }
 0x167   : > { %v530_v41 = vadd.f32 %v1066_v39, %v1694_v25  ;;  %v521_v42 = vpop.f32.mrb[5].mxu0 }
 0x168   : > { %v522_v43 = vadd.f32 %v1694_v25, %v521_v42  ;;  %v1067_v44 = vpop.f32.mrb[6].mxu0 }
 0x169   : > { %v533_v45 = vadd.f32 %v1067_v44, %v1694_v25  ;;  %v524_v46 = vpop.f32.mrb[7].mxu0  ;;  %v638_v48 = vmax.f32 %v530_v41, 0.0 }
 0x16a   : > { %v525_v47 = vadd.f32 %v1694_v25, %v524_v46  ;;  %v636_v50 = vmax.f32 %v522_v43, 0.0 }
 0x16b   : > { %v639_v49 = vmax.f32 %v533_v45, 0.0 }
 0x16c   : > { %v637_v51 = vmax.f32 %v525_v47, 0.0 }
 0x16d   : > { %v1708_v52 = vpack.c.bf16 %v639_v49, %v638_v48 }
 0x16e   : > { %v1710_v53 = vpack.c.bf16 %v637_v51, %v636_v50  ;;  %v1070_v54 = vpop.f32.mrb[8].mxu0 }
 0x16f   : > { %v546_v55 = vadd.f32 %v1070_v54, %v1694_v25  ;;  %v537_v56 = vpop.f32.mrb[9].mxu0 }
 0x170   : > { %v538_v57 = vadd.f32 %v1694_v25, %v537_v56  ;;  %v1071_v58 = vpop.f32.mrb[10].mxu0 }
 0x171   : > { %v549_v59 = vadd.f32 %v1071_v58, %v1694_v25  ;;  %v540_v60 = vpop.f32.mrb[11].mxu0  ;;  %v642_v62 = vmax.f32 %v546_v55, 0.0 }
 0x172   : > { %v541_v61 = vadd.f32 %v1694_v25, %v540_v60  ;;  %v640_v0 = vmax.f32 %v538_v57, 0.0 }
 0x173   : > { %v643_v63 = vmax.f32 %v549_v59, 0.0 }
 0x174   : > { %v641_v1 = vmax.f32 %v541_v61, 0.0 }
 0x175   : > { %v1716_v2 = vpack.c.bf16 %v643_v63, %v642_v62 }
 0x176   : > { %v1718_v3 = vpack.c.bf16 %v641_v1, %v640_v0  ;;  %v1074_v4 = vpop.f32.mrb[12].mxu0 }
 0x177   : > { %v562_v5 = vadd.f32 %v1074_v4, %v1694_v25  ;;  %v553_v6 = vpop.f32.mrb[13].mxu0 }
 0x178   : > { %v554_v7 = vadd.f32 %v1694_v25, %v553_v6  ;;  %v1075_v8 = vpop.f32.mrb[14].mxu0 }
 0x179   : > { %v565_v9 = vadd.f32 %v1075_v8, %v1694_v25  ;;  %v556_v10 = vpop.f32.mrb[15].mxu0  ;;  %v646_v12 = vmax.f32 %v562_v5, 0.0 }
 0x17a   : > { %v557_v11 = vadd.f32 %v1694_v25, %v556_v10  ;;  %v644_v14 = vmax.f32 %v554_v7, 0.0 }
 0x17b   : > { %v647_v13 = vmax.f32 %v565_v9, 0.0 }
 0x17c   : > { %v645_v15 = vmax.f32 %v557_v11, 0.0 }
 0x17d   : > { %v1724_v16 = vpack.c.bf16 %v647_v13, %v646_v12 }
 0x17e   : > { %v1726_v17 = vpack.c.bf16 %v645_v15, %v644_v14  ;;  %v1078_v18 = vpop.f32.mrb[16].mxu0  ;;  %v741_v14 = vld [vmem:[#allocation7] sm:$0xff]  ;;  %v742_v15 = vld [vmem:[#allocation7 + $0x8] sm:$0xff] }
 0x17f   : > { %v578_v19 = vadd.f32 %v1078_v18, %v1694_v25  ;;  %v569_v20 = vpop.f32.mrb[17].mxu0  ;;  %v1448_v18 = vmov 0.0|0.0  }
 0x180   : > { %v570_v21 = vadd.f32 %v1694_v25, %v569_v20  ;;  %v1079_v22 = vpop.f32.mrb[18].mxu0 }
 0x181   : > { %v581_v23 = vadd.f32 %v1079_v22, %v1694_v25  ;;  %v572_v26 = vpop.f32.mrb[19].mxu0  ;;  %v650_v28 = vmax.f32 %v578_v19, 0.0  ;;  %v744_v19 = vld [vmem:[#allocation7 + $0x18] sm:$0xff] }
 0x182   : > { %v573_v27 = vadd.f32 %v1694_v25, %v572_v26  ;;  %v648_v30 = vmax.f32 %v570_v21, 0.0  ;;  %v746_v21 = vld [vmem:[#allocation7 + $0x28] sm:$0xff] }
 0x183   : > { %v651_v29 = vmax.f32 %v581_v23, 0.0  ;;  %v748_v23 = vld [vmem:[#allocation7 + $0x38] sm:$0xff] }
 0x184   : > { %v649_v31 = vmax.f32 %v573_v27, 0.0  ;;  %v750_v27 = vld [vmem:[#allocation7 + $0x48] sm:$0xff] }
 0x185   : > { %v1131_v32 = vpack.c.bf16 %v651_v29, %v650_v28  ;;  %v751_v29 = vld [vmem:[#allocation7 + $0x50] sm:$0xff] }
 0x186   : > { %v1082_v33 = vpop.f32.mrb[20].mxu0  ;;  %v1127_v34 = vpack.c.bf16 %v649_v31, %v648_v30  ;;  %v753_v31 = vld [vmem:[#allocation7 + $0x60] sm:$0xff] }
 0x187   : > { %v594_v35 = vadd.f32 %v1082_v33, %v1694_v25  ;;  %v585_v36 = vpop.f32.mrb[21].mxu0 }
 0x188   : > { %v586_v37 = vadd.f32 %v1694_v25, %v585_v36  ;;  %v1083_v39 = vpop.f32.mrb[22].mxu0  ;;  %1128 = vmatprep.subr.bf16.mxu1 %v1127_v34  ;;  %v755_v34 = vld [vmem:[#allocation7 + $0x70] sm:$0xff] }
 0x189   : > { %v597_v41 = vadd.f32 %v1083_v39, %v1694_v25  ;;  %v588_v42 = vpop.f32.mrb[23].mxu0  ;;  %1130 = vmatpush3.bf16.msra.mxu1 %v1702_v40  ;;  %v654_v44 = vmax.f32 %v594_v35, 0.0  ;;  %v756_v35 = vld [vmem:[#allocation7 + $0x78] sm:$0xff] }
 0x18a   : > { %v589_v43 = vadd.f32 %v1694_v25, %v588_v42  ;;  %1132 = vmatprep.subr.bf16.mxu1 %v1131_v32  ;;  %v652_v46 = vmax.f32 %v586_v37, 0.0  ;;  %v754_v32 = vld [vmem:[#allocation7 + $0x68] sm:$0xff]  ;;  %v1181_v36 = vpack.c.bf16 %v756_v35, %v755_v34  ;;  %v1450_v37 = vmov 0.0  }
 0x18b   : > { %v655_v45 = vmax.f32 %v597_v41, 0.0  ;;  %v1178_v33 = vpack.c.bf16 %v754_v32, %v753_v31 }
 0x18c   : > { %v653_v47 = vmax.f32 %v589_v43, 0.0  ;;  %v757_v43 = vld [vmem:[%s1809_s4] sm:$0x1] }
 0x18d   : > { %v1139_v48 = vpack.c.bf16 %v655_v45, %v654_v44  ;;  %1134 = vmatpush3.bf16.msra.mxu1 %v1700_v38 }
 0x18e   : > { %v1135_v49 = vpack.c.bf16 %v653_v47, %v652_v46  ;;  %v1086_v50 = vpop.f32.mrb[24].mxu0 }
 0x18f   : > { %v610_v51 = vadd.f32 %v1086_v50, %v1694_v25  ;;  %v601_v54 = vpop.f32.mrb[25].mxu0 }
 0x190   : > { %v602_v55 = vadd.f32 %v1694_v25, %v601_v54  ;;  %v1087_v56 = vpop.f32.mrb[26].mxu0  ;;  %1136 = vmatprep.subr.bf16.mxu1 %v1135_v49 }
 0x191   : > { %v613_v40 = vadd.f32 %v1087_v56, %v1694_v25  ;;  %v604_v57 = vpop.f32.mrb[27].mxu0  ;;  %1138 = vmatpush3.bf16.msra.mxu1 %v1710_v53  ;;  %v658_v59 = vmax.f32 %v610_v51, 0.0 }
 0x192   : > { %v605_v58 = vadd.f32 %v1694_v25, %v604_v57  ;;  %1140 = vmatprep.subr.bf16.mxu1 %v1139_v48  ;;  %v656_v38 = vmax.f32 %v602_v55, 0.0 }
 0x193   : > { %v659_v60 = vmax.f32 %v613_v40, 0.0 }
 0x194   : > { %v657_v61 = vmax.f32 %v605_v58, 0.0 }
 0x195   : > { %v1147_v62 = vpack.c.bf16 %v659_v60, %v658_v59  ;;  %1142 = vmatpush3.bf16.msra.mxu1 %v1708_v52 }
 0x196   : > { %v1143_v63 = vpack.c.bf16 %v657_v61, %v656_v38  ;;  %v1090_v0 = vpop.f32.mrb[28].mxu0 }
 0x197   : > { %v626_v1 = vadd.f32 %v1090_v0, %v1694_v25  ;;  %v617_v4 = vpop.f32.mrb[29].mxu0 }
 0x198   : > { %v618_v5 = vadd.f32 %v1694_v25, %v617_v4  ;;  %v1091_v6 = vpop.f32.mrb[30].mxu0  ;;  %1144 = vmatprep.subr.bf16.mxu1 %v1143_v63 }
 0x199   : > { %v629_v53 = vadd.f32 %v1091_v6, %v1694_v25  ;;  %v620_v7 = vpop.f32.mrb[31].mxu0  ;;  %1146 = vmatpush3.bf16.msra.mxu1 %v1718_v3  ;;  %v662_v9 = vmax.f32 %v626_v1, 0.0  ;;  %v1160_v3 = vpack.c.bf16 %v742_v15, %v741_v14 }
 0x19a   : > { %v621_v8 = vadd.f32 %v1694_v25, %v620_v7  ;;  %1148 = vmatprep.subr.bf16.mxu1 %v1147_v62  ;;  %v660_v52 = vmax.f32 %v618_v5, 0.0  ;;  %v743_v25 = vld [vmem:[#allocation7 + $0x10] sm:$0xff] }
 0x19b   : > { %v663_v10 = vmax.f32 %v629_v53, 0.0  ;;  %v1163_v20 = vpack.c.bf16 %v744_v19, %v743_v25 }
 0x19c   : > { %v661_v11 = vmax.f32 %v621_v8, 0.0 }
 0x19d   : > { %v1155_v12 = vpack.c.bf16 %v663_v10, %v662_v9  ;;  %1150 = vmatpush3.bf16.msra.mxu1 %v1716_v2  ;;  %v745_v2 = vld [vmem:[#allocation7 + $0x20] sm:$0xff] }
 0x19e   : > { %v1151_v13 = vpack.c.bf16 %v661_v11, %v660_v52  ;;  %v1166_v22 = vpack.c.bf16 %v746_v21, %v745_v2 }
 0x1a0   : > { %1152 = vmatprep.subr.bf16.mxu1 %v1151_v13 }
 0x1a1   : > { %1154 = vmatpush3.bf16.msra.mxu1 %v1726_v17  ;;  %v747_v17 = vld [vmem:[#allocation7 + $0x30] sm:$0xff] }
 0x1a2   : > { %1156 = vmatprep.subr.bf16.mxu1 %v1155_v12  ;;  %v1169_v26 = vpack.c.bf16 %v748_v23, %v747_v17 }
 0x1a5   : > { %1158 = vmatpush3.bf16.msra.mxu1 %v1724_v16  ;;  %v749_v16 = vld [vmem:[#allocation7 + $0x40] sm:$0xff] }
 0x1a6   : > { %1159 = vmatprep.subr.bf16.mxu1 %v1448_v18  ;;  %v1172_v28 = vpack.c.bf16 %v750_v27, %v749_v16 }
 0x1a8   : > { %736 = vmatmul.mubr.f32.vlgmr.msra.gmra.mrb[0].mxu1 %v1447_v24  ;;  %v752_v24 = vld [vmem:[#allocation7 + $0x58] sm:$0xff] }
 0x1a9   : > { %1161 = vmatpush3.bf16.msra.mxu1 %v1160_v3  ;;  %v1175_v30 = vpack.c.bf16 %v752_v24, %v751_v29  ;;  %1124 = vmatprep.mubr.msk.f32.mxu1 %vm1449_vm0, %v1450_v37 }
 0x1aa   : > { %1162 = vmatprep.subr.bf16.mxu1 %v1448_v18 }
 0x1ad   : > { %1164 = vmatpush3.bf16.msra.mxu1 %v1163_v20 }
 0x1ae   : > { %1165 = vmatprep.subr.bf16.mxu1 %v1448_v18 }
 0x1b1   : > { %1167 = vmatpush3.bf16.msra.mxu1 %v1166_v22 }
 0x1b2   : > { %1168 = vmatprep.subr.bf16.mxu1 %v1448_v18 }
 0x1b5   : > { %1170 = vmatpush3.bf16.msra.mxu1 %v1169_v26 }
 0x1b6   : > { %1171 = vmatprep.subr.bf16.mxu1 %v1448_v18 }
 0x1b9   : > { %1173 = vmatpush3.bf16.msra.mxu1 %v1172_v28 }
 0x1ba   : > { %1174 = vmatprep.subr.bf16.mxu1 %v1448_v18 }
 0x1bd   : > { %1176 = vmatpush3.bf16.msra.mxu1 %v1175_v30 }
 0x1be   : > { %1177 = vmatprep.subr.bf16.mxu1 %v1448_v18 }
 0x1c1   : > { %1179 = vmatpush3.bf16.msra.mxu1 %v1178_v33 }
 0x1c2   : > { %1180 = vmatprep.subr.bf16.mxu1 %v1448_v18 }
 0x1c5   : > { %1182 = vmatpush3.bf16.msra.mxu1 %v1181_v36 }
 0x27b   : > { %v1024_v39 = vpop.f32.mrb[0].mxu1 }
 0x27c   : > { %v1025_v41 = vpop.f32.mrb[1].mxu1 }
 0x27d   : > { %v1026_v42 = vadd.f32 %v1025_v41, %v1024_v39 }
 0x27f   : > { %1125 = vmatmul.mubr.f32.vlgmr.msra.gmra.mrb[2].mxu1 %v1026_v42 }
 0x352   : > { %v824_v44 = vpop.f32.mrb[2].mxu1 }
 0x353   : > { %v825_v45 = vadd.f32 %v824_v44, %v757_v43  ;;  %v1126_v46 = vpop.f32.mrb[3].mxu1 }
 0x355   : > { %828 = vst [vmem:[%s270_s13] sm:$0x1] %v825_v45 }
 0x356   : > { %1381 = shalt.err (!%p1378_p1)
}
 0x357   : > { %s1382_s27 = scalar_lea.hbm %s1761_s12, 16  ;;  %s1386_s26 = scalar_lea.hbm %s1810_s5, 32 }
 0x358   : > { %p1383_p13 = scmp.ne.s32.totalorder %s1761_s12, %s1382_s27  ;;  %p1387_p4 = scmp.lt.u32.totalorder %s1761_s12, %s1810_s5 }
 0x359   : > { %p1388_p7 = scmp.lt.u32.totalorder %s1386_s26, %s1382_s27  ;;  %p1390_p11 = scmp.lt.u32.totalorder %s1382_s27, %s1761_s12 }
 0x35a   : > { %p1384_p6 = pnand %p1383_p13, %p1824_p0 }
 0x35b   : > { %p1389_p8 = por %p1388_p7, %p1387_p4 }
 0x35c   : > { %p1385_p10 = pneg %p1384_p6 }
 0x35d   : > { %p1391_p2 = por %p1390_p11, %p1389_p8 }
 0x35f   : > { %p1392_p3 = pnand %p1391_p2, %p1385_p10 }
 0x361   : > { %1395 = shalt.err (!%p1392_p3)
}
 0x362   : > { %1193 = dma.vmem_to_hbm [thread:$0]  (%p1824_p0), %s1763_s14, 16, %s1761_s12, %s830_s30  }
 0x363 PF: > { %s854_s28 = sand.u32 1, %s1426_s18   ;;  %p1825_p5 = scmp.ne.s32.totalorder %s1815_s25, 0 }
 0x364   : > { %p1826_p9 = scmp.ge.s32.totalorder %s1438_s21, 2  ;;  %s855_s13 = scalar_lea.sflag [#allocation4], %s854_s28 }
 0x366   : > { %p1207_p12 = pnand %p1826_p9, %p1825_p5 }
 0x368   : > { %1421 = dma.done.wait (!%p1207_p12), %s855_s13, 16  }
 0x369   : > { %1423 = vsyncadd (!%p1207_p12), %s855_s13, 4294967280  ;;  %p19_p1 = scmp.ge.s32.totalorder %s1595_s23, 4   ;;  %s1827_s18 = smov %s1430_s19 }
 0x36a   : > { %s1828_s19 = smov %s1434_s20  ;;  %s1829_s20 = smov %s1604_s7 }
 0x36b   : > { %s1830_s21 = smov %s1595_s23  ;;  %21 = sbr.rel (!%p19_p1) target bundleno = 6 (0x6), region = 93 }
 0x372   :  { %859 = vsyncpa [#allocation3], 1 }
 0x373   :  { %861 = vsyncpa [#allocation3 + $0x1], 1 }
 0x374   :  { %862 = vsyncpa [#allocation6], 1 }
 0x375   :  { %863 = vsyncpa [#allocation4], 1 }
 0x376   :  { %865 = vsyncpa [#allocation4 + $0x1], 1 }

</bundles_post_ra>
